<compile_context>
chip_gen: v7x
topology: tpu7x:2x2x1
jax: 0.10.0
libtpu: 0.0.40
codegen_flags: <defaults>
</compile_context>

<pallas_src>
import functools

import jax
import jax.numpy as jnp
from jax import lax
from jax.experimental import pallas as pl
from jax.experimental.pallas import tpu as pltpu


def _round_up(n: int, m: int) -> int:
    return ((n + m - 1) // m) * m


def _svm_kernel(params_ref, x_ref, wt_ref, wsq_ref, b_ref, o_ref, *, degree):
    # params_ref is an SMEM scalar-prefetch ref: [gamma, r]
    gamma = params_ref[0]
    r = params_ref[1]

    x = x_ref[...]        # (bb, D)  f32
    wt = wt_ref[...]      # (D, Cp)  f32   (pre-transposed weights)
    wsq = wsq_ref[...]    # (1, Cp)  f32   (precomputed ||w||^2)
    b = b_ref[...]        # (1, Cp)  f32

    # Squared pairwise distances via the MXU identity  ||x||^2 + ||w||^2 - 2 x.w .
    x_sq = jnp.sum(x * x, axis=1, keepdims=True)                 # (bb, 1)  lane reduce
    xw = jnp.dot(x, wt, preferred_element_type=jnp.float32)      # (bb, Cp) MXU
    d2 = jnp.maximum(x_sq + wsq - 2.0 * xw, 0.0)                 # clamp fp cancellation
    dists = jnp.sqrt(d2)                                         # torch.cdist(..., p=2)

    k = gamma * dists + r
    if float(degree) == int(degree):
        kp = lax.integer_pow(k, int(degree))                     # VPU-only power
    else:
        kp = jnp.power(k, jnp.float32(degree))                   # EUP log/exp path
    o_ref[...] = (kp + b).astype(o_ref.dtype)


def svm_forward(x, weights, bias, gamma, r, degree, *, block_b=512):
    """x: (B, D) f32, weights: (C, D) f32, bias: (C,) f32 -> (B, C) f32."""
    B, D = x.shape
    C, Dw = weights.shape
    assert D == Dw

    # --- Hoisted weight-side work (constant across calls for fixed parameters) ---
    w_t = weights.T.astype(jnp.float32)                              # (D, C)
    w_sq = jnp.sum(weights.astype(jnp.float32) ** 2, axis=1)[None]   # (1, C)
    b2 = bias.astype(jnp.float32)[None, :]                           # (1, C)

    # --- Lane-dense output: pad class dim to a multiple of 128 ---
    C_pad = _round_up(C, 128)
    if C_pad != C:
        pad_c = ((0, 0), (0, C_pad - C))
        w_t = jnp.pad(w_t, pad_c)
        w_sq = jnp.pad(w_sq, pad_c)
        b2 = jnp.pad(b2, pad_c)

    # --- Batch tiling (rows are independent; exact for any tile) ---
    bb = min(block_b, _round_up(B, 8))        # sublane-aligned row tile
    B_pad = _round_up(B, bb)
    x_p = x.astype(jnp.float32)
    if B_pad != B:
        x_p = jnp.pad(x_p, ((0, B_pad - B), (0, 0)))
    nb = B_pad // bb

    # gamma / r as runtime SMEM scalars (no recompile when they change).
    params = jnp.array([gamma, r], dtype=jnp.float32)

    kernel = functools.partial(_svm_kernel, degree=degree)

    out = pl.pallas_call(
        kernel,
        out_shape=jax.ShapeDtypeStruct((B_pad, C_pad), jnp.float32),
        grid_spec=pltpu.PrefetchScalarGridSpec(
            num_scalar_prefetch=1,
            grid=(nb,),
            in_specs=[
                pl.BlockSpec((bb, D), lambda i, p: (i, 0)),        # x tile
                pl.BlockSpec((D, C_pad), lambda i, p: (0, 0)),     # w^T (resident)
                pl.BlockSpec((1, C_pad), lambda i, p: (0, 0)),     # ||w||^2
                pl.BlockSpec((1, C_pad), lambda i, p: (0, 0)),     # bias
            ],
            out_specs=pl.BlockSpec((bb, C_pad), lambda i, p: (i, 0)),
        ),
        compiler_params=pltpu.CompilerParams(
            # Batch tiles are independent -> megacore-shardable on v7x (2 TCs/chip).
            dimension_semantics=("parallel",),
        ),
    )(params, x_p, w_t, w_sq, b2)

    return out[:B, :C]


if __name__ == "__main__":
    key = jax.random.PRNGKey(0)
    k_x, k_w = jax.random.split(key)

    batch = 8
    input_size = 32
    num_classes = 16
    gamma = 0.1
    r = 1.0
    degree = 3

    x = jax.random.normal(k_x, (batch, input_size), dtype=jnp.float32)
    weights = jax.random.normal(k_w, (num_classes, input_size), dtype=jnp.float32)
    bias = jnp.zeros((num_classes,), dtype=jnp.float32)

    out = svm_forward(x, weights, bias, gamma, r, degree)
    out = jax.block_until_ready(out)
    assert out.shape == (batch, num_classes)
    assert bool(jnp.all(jnp.isfinite(out)))

    # Pure-JAX reference (direct (x - w)^2 path, matching torch.cdist semantics).
    d_ref = jnp.sqrt(
        jnp.maximum(jnp.sum((x[:, None, :] - weights[None, :, :]) ** 2, axis=-1), 0.0)
    )
    ref = (gamma * d_ref + r) ** degree + bias[None, :]
    assert bool(jnp.allclose(out, ref, rtol=1e-3, atol=1e-3))

    print("KERNEL_OK")
</pallas_src>

<mosaic_0001>
module attributes {stable_mosaic.version = 11 : i64} {
  func.func @_svm_kernel(%arg0: i32, %arg1: memref<2xf32, #tpu.memory_space<smem>>, %arg2: memref<8x32xf32, #tpu.memory_space<vmem>>, %arg3: memref<32x128xf32, #tpu.memory_space<vmem>>, %arg4: memref<1x128xf32, #tpu.memory_space<vmem>>, %arg5: memref<1x128xf32, #tpu.memory_space<vmem>>, %arg6: memref<8x128xf32, #tpu.memory_space<vmem>>) attributes {dimension_semantics = [#tpu.dimension_semantics<parallel>], iteration_bounds = array<i64: 1>, scalar_prefetch = 1 : i64, scratch_operands = 0 : i64, tpu.core_type = #tpu.core_type<tc>, window_params = [{transform_indices = @transform_0, window_bounds = array<i64: 8, 32>}, {pipeline_mode = #tpu.pipeline_mode<synchronous>, transform_indices = @transform_1, window_bounds = array<i64: 32, 128>}, {pipeline_mode = #tpu.pipeline_mode<synchronous>, transform_indices = @transform_2, window_bounds = array<i64: 1, 128>}, {pipeline_mode = #tpu.pipeline_mode<synchronous>, transform_indices = @transform_3, window_bounds = array<i64: 1, 128>}, {transform_indices = @transform_4, window_bounds = array<i64: 8, 128>}]} {
    %c0 = arith.constant 0 : index
    %0 = memref.load %arg1[%c0] : memref<2xf32, #tpu.memory_space<smem>>
    %c1 = arith.constant 1 : index
    %1 = memref.load %arg1[%c1] : memref<2xf32, #tpu.memory_space<smem>>
    %c0_0 = arith.constant 0 : index
    %c0_1 = arith.constant 0 : index
    %2 = vector.load %arg2[%c0_0, %c0_1] : memref<8x32xf32, #tpu.memory_space<vmem>>, vector<8x32xf32>
    %c0_2 = arith.constant 0 : index
    %c0_3 = arith.constant 0 : index
    %3 = vector.load %arg3[%c0_2, %c0_3] : memref<32x128xf32, #tpu.memory_space<vmem>>, vector<32x128xf32>
    %c0_4 = arith.constant 0 : index
    %c0_5 = arith.constant 0 : index
    %4 = vector.load %arg4[%c0_4, %c0_5] : memref<1x128xf32, #tpu.memory_space<vmem>>, vector<1x128xf32>
    %c0_6 = arith.constant 0 : index
    %c0_7 = arith.constant 0 : index
    %5 = vector.load %arg5[%c0_6, %c0_7] : memref<1x128xf32, #tpu.memory_space<vmem>>, vector<1x128xf32>
    %6 = arith.mulf %2, %2 : vector<8x32xf32>
    %cst = arith.constant dense<0.000000e+00> : vector<8xf32>
    %7 = vector.multi_reduction <add>, %6, %cst [1] : vector<8x32xf32> to vector<8xf32>
    %8 = vector.shape_cast %7 : vector<8xf32> to vector<8x1xf32>
    %cst_8 = arith.constant dense<0.000000e+00> : vector<8x128xf32>
    %9 = tpu.matmul %2, %3, %cst_8 {dimension_numbers = #tpu.dot_dimension_numbers<[1], [0], [0], [1], [0, 0, 1, 1], [], []>} : vector<8x32xf32>, vector<32x128xf32>, vector<8x128xf32> -> vector<8x128xf32>
    %10 = vector.broadcast %8 : vector<8x1xf32> to vector<8x128xf32>
    %11 = vector.broadcast %4 : vector<1x128xf32> to vector<8x128xf32>
    %12 = arith.addf %10, %11 : vector<8x128xf32>
    %cst_9 = arith.constant 2.000000e+00 : f32
    %13 = vector.broadcast %cst_9 : f32 to vector<8x128xf32>
    %14 = arith.mulf %13, %9 : vector<8x128xf32>
    %15 = arith.subf %12, %14 : vector<8x128xf32>
    %cst_10 = arith.constant 0.000000e+00 : f32
    %16 = vector.broadcast %cst_10 : f32 to vector<8x128xf32>
    %17 = arith.maximumf %15, %16 : vector<8x128xf32>
    %18 = math.sqrt %17 : vector<8x128xf32>
    %19 = vector.broadcast %0 : f32 to vector<8x128xf32>
    %20 = arith.mulf %19, %18 : vector<8x128xf32>
    %21 = vector.broadcast %1 : f32 to vector<8x128xf32>
    %22 = arith.addf %20, %21 : vector<8x128xf32>
    %23 = arith.mulf %22, %22 : vector<8x128xf32>
    %24 = arith.mulf %22, %23 : vector<8x128xf32>
    %25 = vector.broadcast %5 : vector<1x128xf32> to vector<8x128xf32>
    %26 = arith.addf %24, %25 : vector<8x128xf32>
    %c0_11 = arith.constant 0 : index
    %c0_12 = arith.constant 0 : index
    %27 = vector.load %arg6[%c0_11, %c0_12] : memref<8x128xf32, #tpu.memory_space<vmem>>, vector<8x128xf32>
    tpu.vector_store %arg6[%c0_11, %c0_12], %26 {strides = array<i32>} : memref<8x128xf32, #tpu.memory_space<vmem>>, vector<8x128xf32>,
    return
  }
  func.func @transform_0(%arg0: i32, %arg1: memref<2xf32, #tpu.memory_space<smem>>) -> (i32, i32) {
    %c0_i32 = arith.constant 0 : i32
    %c0_i32_0 = arith.constant 0 : i32
    return %arg0, %c0_i32 : i32, i32
  }
  func.func @transform_1(%arg0: i32, %arg1: memref<2xf32, #tpu.memory_space<smem>>) -> (i32, i32) {
    %c0_i32 = arith.constant 0 : i32
    %c0_i32_0 = arith.constant 0 : i32
    %c0_i32_1 = arith.constant 0 : i32
    return %c0_i32, %c0_i32_0 : i32, i32
  }
  func.func @transform_2(%arg0: i32, %arg1: memref<2xf32, #tpu.memory_space<smem>>) -> (i32, i32) {
    %c0_i32 = arith.constant 0 : i32
    %c0_i32_0 = arith.constant 0 : i32
    %c0_i32_1 = arith.constant 0 : i32
    return %c0_i32, %c0_i32_0 : i32, i32
  }
  func.func @transform_3(%arg0: i32, %arg1: memref<2xf32, #tpu.memory_space<smem>>) -> (i32, i32) {
    %c0_i32 = arith.constant 0 : i32
    %c0_i32_0 = arith.constant 0 : i32
    %c0_i32_1 = arith.constant 0 : i32
    return %c0_i32, %c0_i32_0 : i32, i32
  }
  func.func @transform_4(%arg0: i32, %arg1: memref<2xf32, #tpu.memory_space<smem>>) -> (i32, i32) {
    %c0_i32 = arith.constant 0 : i32
    %c0_i32_0 = arith.constant 0 : i32
    return %arg0, %c0_i32 : i32, i32
  }
}

</mosaic_0001>

<bundles_post_ra>
// kernel: tpu_custom_call.1
= control target key start
LH: loop header
LB: loop body
LE: loop exit
PB: predicated region body
PF: predicated region fallthrough
CT: control target
= control target key end

     0   :  { %s404_s0 = inlined_call_operand.hbm [shape: f32[2], index: 0, kind: input, shape index: {}]   ;;  %s405_s1 = inlined_call_operand.hbm [shape: f32[8,32], index: 1, kind: input, shape index: {}]   ;;  %s406_s2 = inlined_call_operand.hbm [shape: f32[32,128], index: 2, kind: input, shape index: {}]   ;;  %s407_s3 = inlined_call_operand.vmem [shape: f32[1,128], index: 3, kind: input, shape index: {}]   ;;  %s408_s4 = inlined_call_operand.vmem [shape: f32[1,128], index: 4, kind: input, shape index: {}]   ;;  %s409_s5 = inlined_call_operand.hbm [shape: f32[8,128], index: 5, kind: output, shape index: {}]  }
   0x1   :  { %s220_s20 = scalar_lea.hbm %s404_s0, 16 }
   0x2   :  { %p221_p0 = scmp.ne.s32.totalorder %s404_s0, %s220_s20  ;;  %p224_p1 = scmp.lt.u32.totalorder %s220_s20, %s404_s0 }
   0x4   :  { %p226_p2 = pnand %p224_p1, %p221_p0 }
   0x6   :  { %229 = shalt.err (!%p226_p2)  }
   0x7   :  { %s304_s25 = smov [#allocation3]  }
   0x8   :  { %11 = dma.hbm_to_smem %s404_s0, 16, %s304_s25, [#allocation2] }
   0x9   :  { %296 = dma.done.wait [#allocation2], 16 }
   0xa   :  { %297 = vsyncadd [#allocation2], 4294967280 }
   0xb   :  { %13 = sfence }
   0xc   :  { %14 = vsyncpa [#allocation5], 0 }
   0xd   :  { %15 = vsyncpa [#allocation8], 0 }
   0xe   :  { %16 = vsyncpa [#allocation6], 0  ;;  %s305_s28 = smov [#allocation4]   ;;  %s306_s30 = smov [#allocation7]  }
   0xf   :  { %s23_s29 = sshll.u32 %s305_s28, 4  ;;  %s32_s6 = sshll.u32 %s306_s30, 4  ;;  %s24_s29 = int_to_ptr.vmem [resolvable:$true] %s23_s29  ;;  %s355_s6 = int_to_ptr.vmem [resolvable:$true] %s32_s6 }
  0x10   :  { %s230_s9 = scalar_lea.hbm %s405_s1, 128 }
  0x11   :  { %p231_p3 = scmp.ne.s32.totalorder %s405_s1, %s230_s9  ;;  %p234_p4 = scmp.lt.u32.totalorder %s230_s9, %s405_s1 }
  0x13   :  { %p236_p5 = pnand %p234_p4, %p231_p3 }
  0x15   :  { %239 = shalt.err (!%p236_p5)
}
  0x16   :  { %s240_s13 = scalar_lea.vmem %s24_s29, 128  ;;  %p245_p7 = scmp.lt.s32.totalorder %s24_s29, %s24_s29 }
  0x17   :  { %p241_p6 = scmp.ne.s32.totalorder %s24_s29, %s240_s13  ;;  %p246_p8 = scmp.lt.s32.totalorder %s240_s13, %s240_s13 }
  0x19   :  { %p247_p9 = por %p246_p8, %p245_p7 }
  0x1b   :  { %p248_p10 = pnand %p247_p9, %p241_p6 }
  0x1d   :  { %251 = shalt.err (!%p248_p10)
}
  0x1e   :  { %26 = dma.hbm_to_vmem [thread:$0]  %s405_s1, 128, %s24_s29, [#allocation5]  }
  0x1f   :  { %s252_s18 = scalar_lea.hbm %s406_s2, 512 }
  0x20   :  { %p253_p11 = scmp.ne.s32.totalorder %s406_s2, %s252_s18  ;;  %p256_p12 = scmp.lt.u32.totalorder %s252_s18, %s406_s2 }
  0x22   :  { %p258_p13 = pnand %p256_p12, %p253_p11 }
  0x24   :  { %261 = shalt.err (!%p258_p13)
}
  0x25   :  { %s262_s23 = scalar_lea.vmem %s355_s6, 512  ;;  %p267_p1 = scmp.lt.s32.totalorder %s355_s6, %s355_s6 }
  0x26   :  { %p263_p0 = scmp.ne.s32.totalorder %s355_s6, %s262_s23  ;;  %p268_p2 = scmp.lt.s32.totalorder %s262_s23, %s262_s23 }
  0x28   :  { %p269_p3 = por %p268_p2, %p267_p1 }
  0x2a   :  { %p270_p4 = pnand %p269_p3, %p263_p0 }
  0x2c   :  { %273 = shalt.err (!%p270_p4)
}
  0x2d   :  { %s307_s1 = smov 128   ;;  %s308_s24 = smov 8  }
  0x2e   :  { %38 = dma.hbm_to_vmem [thread:$0]  %s406_s2, 512, %s355_s6, [#allocation8], %s307_s1, %s307_s1, %s308_s24  }
  0x2f   :  { %298 = dma.done.wait [#allocation5], 128  }
  0x30   :  { %299 = vsyncadd [#allocation5], 4294967168 }
  0x31   :  { %300 = dma.done.wait [#allocation8], 512  }
  0x32   :  { %301 = vsyncadd [#allocation8], 4294966784  ;;  %v309_v0 = vmov 0.0|0.0   ;;  %vm310_vm0 = vmmov 0   ;;  %v311_v1 = vmov 0.0   ;;  %v52_v2 = vld [vmem:[#allocation7] sm:$0xff] }
  0x33   :  { %203 = vmatprep.subr.bf16.mxu0 %v309_v0  ;;  %200 = vmatprep.mubr.msk.f32.mxu0 %vm310_vm0, %v311_v1  ;;  %v53_v3 = vld [vmem:[#allocation7 + $0x8] sm:$0xff]  ;;  %v54_v4 = vld [vmem:[#allocation7 + $0x10] sm:$0xff]  ;;  %v55_v6 = vld [vmem:[#allocation7 + $0x18] sm:$0xff]  ;;  %vm59_vm1 = vcmask 261120   ;;  %s49_s28 = sld [smem:[#allocation3]]  ;;  %s183_s29 = sld [smem:[#allocation3 + $0x1]] }
  0x34   :  { %v204_v5 = vpack.c.bf16 %v53_v3, %v52_v2  ;;  %v51_v7 = vld [vmem:[#allocation4] sm:$0xff]  ;;  %v207_v9 = vpack.c.bf16 %v55_v6, %v54_v4  ;;  %s312_s6 = smov [#allocation9]  }
  0x35   :  { %v58_v8 = vmul.f32 %v51_v7, %v51_v7  ;;  %v185_v11 = vld [vmem:[%s407_s3] ss:$0 sm:$0xff]  ;;  %s173_s7 = sshll.u32 %s312_s6, 4  ;;  %s174_s7 = int_to_ptr.vmem [resolvable:$true] %s173_s7 }
  0x36   :  { %205 = vmatpush3.bf16.msra.mxu0 %v204_v5  ;;  %v186_v29 = vld [vmem:[%s408_s4] ss:$0 sm:$0xff]  ;;  %s274_s8 = scalar_lea.vmem %s174_s7, 128  ;;  %p279_p6 = scmp.lt.s32.totalorder %s174_s7, %s174_s7 }
  0x37   :  { %206 = vmatprep.subr.bf16.mxu0 %v309_v0  ;;  %v60_v10 = vsel %vm59_vm1, %v58_v8, 0.0  ;;  %p275_p5 = scmp.ne.s32.totalorder %s174_s7, %s274_s8  ;;  %p280_p7 = scmp.lt.s32.totalorder %s274_s8, %s274_s8 }
  0x38   :  { %61 = vadd.xlane.f32.xlu0 %v60_v10 }
  0x39   :  { %v153_v22 = vstv %s49_s28  ;;  %v155_v25 = vstv %s183_s29  ;;  %p281_p8 = por %p280_p7, %p279_p6 }
  0x3a   :  { %208 = vmatpush3.bf16.msra.mxu0 %v207_v9 }
  0x3b   :  { %p282_p9 = pnand %p281_p8, %p275_p5 }
  0x3d   :  { %201 = vmatmul.mubr.msk.f32.vlgmr.msra.gmra.mrb[0].mxu0 %vm59_vm1, %v51_v7 }
  0xc5   :  { %v62_v12 = vpop.xlane.xlu0 %61 }
  0xc6   :  { %v142_v13 = vadd.f32 %v185_v11, %v62_v12 }
 0x110   :  { %v132_v14 = vpop.f32.mrb[0].mxu0 }
 0x111   :  { %v143_v15 = vmul.f32 2.0, %v132_v14  ;;  %v202_v16 = vpop.f32.mrb[1].mxu0 }
 0x113   :  { %v144_v17 = vsub.f32 %v142_v13, %v143_v15 }
 0x115   :  { %v145_v18 = vmax.f32 %v144_v17, 0.0 }
 0x117   :  { %218 = vrsqrt.f32 %v145_v18  ;;  %vm148_vm2 = vcmp.eq.f32.partialorder %v145_v18, inf  ;;  %v151_v21 = vand.u32 2147483648, %v145_v18  ;;  %vm150_vm3 = vcmp.eq.f32.partialorder %v145_v18, 0.0 }
 0x121   :  { %v219_v19 = vpop.eup %218 }
 0x122   :  { %v147_v20 = vmul.f32 %v219_v19, %v145_v18 }
 0x124   :  { %v149_v23 = vsel %vm148_vm2, %v145_v18, %v147_v20 }
 0x125   :  { %v152_v24 = vsel %vm150_vm3, %v151_v21, %v149_v23 }
 0x126   :  { %v154_v26 = vmul.f32 %v153_v22, %v152_v24 }
 0x128   :  { %v156_v27 = vadd.f32 %v155_v25, %v154_v26 }
 0x12a   :  { %v157_v28 = vmul.f32 %v156_v27, %v156_v27 }
 0x12c   :  { %v158_v30 = vmul.f32 %v157_v28, %v156_v27 }
 0x12e   :  { %v165_v31 = vadd.f32 %v186_v29, %v158_v30 }
 0x130   :  { %166 = vst [vmem:[#allocation9] sm:$0xff] %v165_v31 }
 0x131   :  { %285 = shalt.err (!%p282_p9)
}
 0x132   :  { %s286_s11 = scalar_lea.hbm %s409_s5, 128 }
 0x133   :  { %p287_p10 = scmp.ne.s32.totalorder %s409_s5, %s286_s11  ;;  %p290_p11 = scmp.lt.u32.totalorder %s286_s11, %s409_s5 }
 0x135   :  { %p292_p12 = pnand %p290_p11, %p287_p10 }
 0x137   :  { %295 = shalt.err (!%p292_p12)
}
 0x138   :  { %176 = dma.vmem_to_hbm [thread:$0]  %s174_s7, 128, %s409_s5, [#allocation6]  }
 0x139   :  { %302 = dma.done.wait [#allocation6], 128  }
 0x13a   :  { %303 = vsyncadd [#allocation6], 4294967168 }
 0x13b   :  { %180 = vsyncpa [#allocation5], 1 }
 0x13c   :  { %181 = vsyncpa [#allocation8], 1 }
 0x13d   :  { %182 = vsyncpa [#allocation6], 1 }

</bundles_post_ra>
